<compile_context>
chip_gen: v6e
topology: v6e:2x2x1
jax: 0.10.0
libtpu: 0.0.40
codegen_flags: <defaults>
</compile_context>

<pallas_src>
import jax
import jax.numpy as jnp
from jax import lax
from jax.experimental import pallas as pl
from jax.experimental.pallas import tpu as pltpu


def _lora_factored_kernel(x_ref, wd_ref, wu_ref, o_ref):
    # x_ref:  (Bblk, 1, Cin,  THW)  pixel tile(s) of Bblk samples of one branch
    # wd_ref: (rank, Cin)           scale-folded down weight of this branch
    # wu_ref: (Cout, rank)          up weight of this branch
    # o_ref:  (Bblk, 1, Cout, THW)
    wd = wd_ref[...]
    wu = wu_ref[...]
    for b in range(x_ref.shape[0]):            # static, small Bblk
        h = lax.dot_general(
            wd, x_ref[b, 0, :, :],
            dimension_numbers=(((1,), (0,)), ((), ())),
            preferred_element_type=jnp.float32)
        y = lax.dot_general(
            wu, h.astype(wu.dtype),
            dimension_numbers=(((1,), (0,)), ((), ())),
            preferred_element_type=jnp.float32)
        o_ref[b, 0, :, :] = y.astype(o_ref.dtype)


def _lora_fused_kernel(x_ref, w_ref, o_ref):
    # x_ref: (Bblk, 1, Cin, THW); w_ref: (Cout, Cin) fused, pre-scaled weight
    w = w_ref[...]
    for b in range(x_ref.shape[0]):
        y = lax.dot_general(
            w, x_ref[b, 0, :, :],
            dimension_numbers=(((1,), (0,)), ((), ())),
            preferred_element_type=jnp.float32)
        o_ref[b, 0, :, :] = y.astype(o_ref.dtype)


def _choose_tiling(B6, Cin, Cout, HW, dsize, w_bytes):
    """Pick (Bblk, THW, n_hw): aim for ~2048 lanes of work per pipeline step while
    keeping the double-buffered VMEM footprint <= ~24 MiB (fits v7x's 64 MiB)."""
    budget = 24 * 1024 * 1024
    per_lane = 2 * (Cin + Cout) * dsize + (Cout + 16) * 4   # dbl-buffered in/out + f32 temps
    lanes_cap = (budget - 4 * w_bytes) // per_lane
    lanes_cap = max(128, (lanes_cap // 128) * 128)
    target = int(min(2048, lanes_cap))
    if HW <= target:
        THW = HW
        bmax = max(1, min(B6, target // max(HW, 1)))
        Bblk = 1
        for d in range(bmax, 0, -1):            # largest divisor of B6 <= bmax
            if B6 % d == 0:
                Bblk = d
                break
    else:
        Bblk = 1
        THW = target
        for t in range(target, 127, -128):      # prefer a tile that divides HW
            if HW % t == 0:
                THW = t
                break
    return Bblk, THW, pl.cdiv(HW, THW)


def triplane_lora_conv2d(hidden_states, w_down, w_up, *, network_alpha=None):
    """hidden_states: (B, Cin, H, W) with B % 6 == 0 (NCHW, like PyTorch).
    w_down: (6, rank, Cin) per-branch down 1x1 conv weights (OIHW squeezed),
            branch order [xy_geo, xz_geo, yz_geo, xy_tex, xz_tex, yz_tex].
    w_up:   (6, Cout, rank) per-branch up 1x1 conv weights (OIHW squeezed).
    Returns (B, Cout, H, W) in hidden_states.dtype.
    """
    orig_dtype = hidden_states.dtype
    B, Cin, H, W = hidden_states.shape
    assert B % 6 == 0, "hexa LoCON requires batch divisible by 6"
    assert w_down.ndim == 3 and w_down.shape[0] == 6 and w_down.shape[2] == Cin
    assert w_up.ndim == 3 and w_up.shape[0] == 6 and w_up.shape[2] == w_down.shape[1]
    B6 = B // 6
    rank = w_down.shape[1]
    Cout = w_up.shape[1]
    HW = H * W
    dsize = jnp.dtype(orig_dtype).itemsize

    scale = None
    if network_alpha is not None:
        scale = jnp.asarray(network_alpha, jnp.float32) / rank   # traced-safe

    # Factored (two matmuls, rank-r intermediate) unless fusing is actually
    # cheaper: fused MXU flops / weight bytes ~ Cin*Cout vs factored ~ rank*(Cin+Cout).
    use_factored = rank * (Cin + Cout) < Cin * Cout

    if use_factored:
        wd = w_down.astype(jnp.float32)
        if scale is not None:
            wd = wd * scale                     # fold alpha/rank into the down weight
        weight_args = (wd.astype(orig_dtype), w_up.astype(orig_dtype))
        w_bytes = (rank * Cin + Cout * rank) * dsize
        kernel_fn = _lora_factored_kernel
        weight_specs = [
            pl.BlockSpec((None, rank, Cin), lambda br, bb, p: (br, 0, 0)),
            pl.BlockSpec((None, Cout, rank), lambda br, bb, p: (br, 0, 0)),
        ]
    else:
        w_eff = jnp.einsum('bor,brc->boc',
                           w_up.astype(jnp.float32), w_down.astype(jnp.float32))
        if scale is not None:
            w_eff = w_eff * scale
        weight_args = (w_eff.astype(orig_dtype),)
        w_bytes = Cout * Cin * dsize
        kernel_fn = _lora_fused_kernel
        weight_specs = [
            pl.BlockSpec((None, Cout, Cin), lambda br, bb, p: (br, 0, 0)),
        ]

    Bblk, THW, n_hw = _choose_tiling(B6, Cin, Cout, HW, dsize, w_bytes)

    # (B, Cin, H, W) -> (B6, 6, Cin, H*W): free row-major reshape (sample = bb*6 + br).
    x4 = hidden_states.reshape(B6, 6, Cin, HW)

    est_vmem = (2 * Bblk * (Cin + Cout) * THW * dsize   # double-buffered in/out tiles
                + 4 * w_bytes                           # double-buffered weight blocks
                + (Cout + 16) * THW * 4)                # f32 temps inside the kernel
    vmem_limit = int(min(48 * 1024 * 1024, max(32 * 1024 * 1024, 2 * est_vmem)))

    out = pl.pallas_call(
        kernel_fn,
        out_shape=jax.ShapeDtypeStruct((B6, 6, Cout, HW), orig_dtype),
        grid_spec=pltpu.PrefetchScalarGridSpec(
            num_scalar_prefetch=0,
            grid=(6, B6 // Bblk, n_hw),          # branch outermost -> weight resident
            in_specs=[
                pl.BlockSpec((Bblk, 1, Cin, THW),
                             lambda br, bb, p: (bb, br, 0, p)),
                *weight_specs,
            ],
            out_specs=pl.BlockSpec((Bblk, 1, Cout, THW),
                                   lambda br, bb, p: (bb, br, 0, p)),
        ),
        compiler_params=pltpu.CompilerParams(
            dimension_semantics=("parallel", "parallel", "parallel"),
            vmem_limit_bytes=vmem_limit),
    )(x4, *weight_args)

    # (B6, 6, Cout, H*W) -> (B, Cout, H, W): free reshape.
    return out.reshape(B, Cout, H, W)


def _reference(hidden_states, w_down, w_up, *, network_alpha):
    # pure-JAX reference of the PyTorch forward (two 1x1 convs per branch, f32)
    B, Cin, H, W = hidden_states.shape
    rank = w_down.shape[1]
    Cout = w_up.shape[1]
    x = hidden_states.astype(jnp.float32)
    out = jnp.zeros((B, Cout, H, W), jnp.float32)
    for i in range(6):
        xs = x[i::6]                                               # (B6, Cin, H, W)
        h = jnp.einsum('bchw,rc->brhw', xs, w_down[i].astype(jnp.float32))
        y = jnp.einsum('brhw,or->bohw', h, w_up[i].astype(jnp.float32))
        out = out.at[i::6].set(y)
    if network_alpha is not None:
        out = out * (network_alpha / rank)
    return out.astype(hidden_states.dtype)


if __name__ == "__main__":
    key = jax.random.PRNGKey(0)

    def make_case(k, B, Cin, Cout, rank, H, W, dtype):
        k1, k2, k3 = jax.random.split(k, 3)
        x = jax.random.normal(k1, (B, Cin, H, W), jnp.float32).astype(dtype)
        # Deterministic synthetic weights (down ~ N(0, 1/rank); up random instead
        # of zeros so the output is non-trivial — synthetic, not a checkpoint).
        wd = (jax.random.normal(k2, (6, rank, Cin), jnp.float32) / rank).astype(dtype)
        wu = (jax.random.normal(k3, (6, Cout, rank), jnp.float32) * 0.1).astype(dtype)
        return x, wd, wu

    alpha = 8.0
    ok = True

    # 1) tiny channels -> fused-weight path; Bblk>1 sample blocking (HW=256)
    x, wd, wu = make_case(jax.random.fold_in(key, 1), B=12, Cin=8, Cout=8, rank=4,
                          H=16, W=16, dtype=jnp.float32)
    y = jax.block_until_ready(triplane_lora_conv2d(x, wd, wu, network_alpha=alpha))
    y_ref = _reference(x, wd, wu, network_alpha=alpha)
    assert y.shape == y_ref.shape and y.dtype == x.dtype
    ok &= bool(jnp.allclose(y, y_ref, atol=1e-4, rtol=1e-4))

    # 2) larger channels -> factored path; HW=4096 > 2048 exercises HW tiling
    x, wd, wu = make_case(jax.random.fold_in(key, 2), B=6, Cin=16, Cout=16, rank=4,
                          H=64, W=64, dtype=jnp.float32)
    y = jax.block_until_ready(triplane_lora_conv2d(x, wd, wu, network_alpha=alpha))
    y_ref = _reference(x, wd, wu, network_alpha=alpha)
    ok &= bool(jnp.allclose(y, y_ref, atol=1e-4, rtol=1e-4))

    # 3) bf16 I/O on the factored path (halved HBM bytes; looser tolerance vs f32 ref)
    x, wd, wu = make_case(jax.random.fold_in(key, 3), B=12, Cin=32, Cout=32, rank=4,
                          H=16, W=16, dtype=jnp.bfloat16)
    y = jax.block_until_ready(triplane_lora_conv2d(x, wd, wu, network_alpha=alpha))
    y_ref = _reference(x, wd, wu, network_alpha=alpha)
    ok &= bool(jnp.allclose(y.astype(jnp.float32), y_ref.astype(jnp.float32),
                            atol=5e-2, rtol=5e-2))

    assert ok
    print("KERNEL_OK")
</pallas_src>

<mosaic_0001>
module attributes {stable_mosaic.version = 11 : i64} {
  func.func @_lora_fused_kernel(%arg0: i32, %arg1: i32, %arg2: i32, %arg3: memref<2x1x8x256xf32, #tpu.memory_space<vmem>>, %arg4: memref<1x8x8xf32, #tpu.memory_space<vmem>>, %arg5: memref<2x1x8x256xf32, #tpu.memory_space<vmem>>) attributes {dimension_semantics = [#tpu.dimension_semantics<parallel>, #tpu.dimension_semantics<parallel>, #tpu.dimension_semantics<parallel>], iteration_bounds = array<i64: 6, 1, 1>, scalar_prefetch = 0 : i64, scratch_operands = 0 : i64, tpu.core_type = #tpu.core_type<tc>, window_params = [{transform_indices = @transform_0, window_bounds = array<i64: 2, 1, 8, 256>}, {transform_indices = @transform_1, window_bounds = array<i64: 1, 8, 8>}, {transform_indices = @transform_2, window_bounds = array<i64: 2, 1, 8, 256>}]} {
    %c0 = arith.constant 0 : index
    %c0_0 = arith.constant 0 : index
    %c0_1 = arith.constant 0 : index
    %0 = vector.load %arg4[%c0, %c0_0, %c0_1] : memref<1x8x8xf32, #tpu.memory_space<vmem>>, vector<1x8x8xf32>
    %1 = vector.shape_cast %0 : vector<1x8x8xf32> to vector<8x8xf32>
    %c0_2 = arith.constant 0 : index
    %c0_3 = arith.constant 0 : index
    %c0_4 = arith.constant 0 : index
    %c0_5 = arith.constant 0 : index
    %2 = vector.load %arg3[%c0_2, %c0_3, %c0_4, %c0_5] : memref<2x1x8x256xf32, #tpu.memory_space<vmem>>, vector<1x1x8x256xf32>
    %3 = vector.shape_cast %2 : vector<1x1x8x256xf32> to vector<8x256xf32>
    %cst = arith.constant dense<0.000000e+00> : vector<8x256xf32>
    %4 = tpu.matmul %1, %3, %cst {dimension_numbers = #tpu.dot_dimension_numbers<[1], [0], [0], [1], [0, 0, 1, 1], [], []>} : vector<8x8xf32>, vector<8x256xf32>, vector<8x256xf32> -> vector<8x256xf32>
    %c0_6 = arith.constant 0 : index
    %c0_7 = arith.constant 0 : index
    %c0_8 = arith.constant 0 : index
    %c0_9 = arith.constant 0 : index
    %5 = vector.load %arg5[%c0_6, %c0_7, %c0_8, %c0_9] : memref<2x1x8x256xf32, #tpu.memory_space<vmem>>, vector<1x1x8x256xf32>
    %6 = vector.shape_cast %5 : vector<1x1x8x256xf32> to vector<8x256xf32>
    %7 = vector.shape_cast %4 : vector<8x256xf32> to vector<1x1x8x256xf32>
    tpu.vector_store %arg5[%c0_6, %c0_7, %c0_8, %c0_9], %7 {strides = array<i32>} : memref<2x1x8x256xf32, #tpu.memory_space<vmem>>, vector<1x1x8x256xf32>,
    %c1 = arith.constant 1 : index
    %c0_10 = arith.constant 0 : index
    %c0_11 = arith.constant 0 : index
    %c0_12 = arith.constant 0 : index
    %8 = vector.load %arg3[%c1, %c0_10, %c0_11, %c0_12] : memref<2x1x8x256xf32, #tpu.memory_space<vmem>>, vector<1x1x8x256xf32>
    %9 = vector.shape_cast %8 : vector<1x1x8x256xf32> to vector<8x256xf32>
    %cst_13 = arith.constant dense<0.000000e+00> : vector<8x256xf32>
    %10 = tpu.matmul %1, %9, %cst_13 {dimension_numbers = #tpu.dot_dimension_numbers<[1], [0], [0], [1], [0, 0, 1, 1], [], []>} : vector<8x8xf32>, vector<8x256xf32>, vector<8x256xf32> -> vector<8x256xf32>
    %c1_14 = arith.constant 1 : index
    %c0_15 = arith.constant 0 : index
    %c0_16 = arith.constant 0 : index
    %c0_17 = arith.constant 0 : index
    %11 = vector.load %arg5[%c1_14, %c0_15, %c0_16, %c0_17] : memref<2x1x8x256xf32, #tpu.memory_space<vmem>>, vector<1x1x8x256xf32>
    %12 = vector.shape_cast %11 : vector<1x1x8x256xf32> to vector<8x256xf32>
    %13 = vector.shape_cast %10 : vector<8x256xf32> to vector<1x1x8x256xf32>
    tpu.vector_store %arg5[%c1_14, %c0_15, %c0_16, %c0_17], %13 {strides = array<i32>} : memref<2x1x8x256xf32, #tpu.memory_space<vmem>>, vector<1x1x8x256xf32>,
    return
  }
  func.func @transform_0(%arg0: i32, %arg1: i32, %arg2: i32) -> (i32, i32, i32, i32) {
    %c0_i32 = arith.constant 0 : i32
    %c0_i32_0 = arith.constant 0 : i32
    return %arg1, %arg0, %c0_i32, %arg2 : i32, i32, i32, i32
  }
  func.func @transform_1(%arg0: i32, %arg1: i32, %arg2: i32) -> (i32, i32, i32) {
    %c0_i32 = arith.constant 0 : i32
    %c0_i32_0 = arith.constant 0 : i32
    %c0_i32_1 = arith.constant 0 : i32
    return %arg0, %c0_i32, %c0_i32_0 : i32, i32, i32
  }
  func.func @transform_2(%arg0: i32, %arg1: i32, %arg2: i32) -> (i32, i32, i32, i32) {
    %c0_i32 = arith.constant 0 : i32
    %c0_i32_0 = arith.constant 0 : i32
    return %arg1, %arg0, %c0_i32, %arg2 : i32, i32, i32, i32
  }
}

</mosaic_0001>

<bundles_post_ra>
// kernel: tpu_custom_call.1
= control target key start
LH: loop header
LB: loop body
LE: loop exit
PB: predicated region body
PF: predicated region fallthrough
CT: control target
= control target key end

     0   :  { %s967_s0 = inlined_call_operand.hbm [shape: f32[2,6,8,256], index: 0, kind: input, shape index: {}]   ;;  %s968_s1 = inlined_call_operand.hbm [shape: f32[6,8,8], index: 1, kind: input, shape index: {}]   ;;  %s969_s2 = inlined_call_operand.hbm [shape: f32[2,6,8,256], index: 2, kind: output, shape index: {}]  }
   0x1   :  { %970 = sst [smem:[#allocation11_spill]] %s967_s0 }
   0x2   :  { %7 = vsyncpa [#allocation3], 0 }
   0x3   :  { %9 = vsyncpa [#allocation3 + $0x1], 0 }
   0x4   :  { %10 = vsyncpa [#allocation6], 0 }
   0x5   :  { %12 = vsyncpa [#allocation6 + $0x1], 0 }
   0x6   :  { %13 = vsyncpa [#allocation4], 0 }
   0x7   :  { %15 = vsyncpa [#allocation4 + $0x1], 0  ;;  %s795_s9 = smov 0   ;;  %s797_s10 = smov 0  }
   0x8   :  { %s799_s11 = smov 0   ;;  %s801_s12 = smov 0  }
   0x9   :  { %s803_s13 = smov 0   ;;  %s805_s14 = smov 0  }
   0xa LB: > { %s528_s15 = sadd.s32 4294967295, %s768_s14   ;;  %s529_s16 = sadd.s32 4294967294, %s768_s14   ;;  %s768_s14 = sphi %s805_s14, %s21_s14   ;;  %s764_s13 = sphi %s803_s13, %s982_s13   ;;  %s760_s12 = sphi %s801_s12, %s981_s12   ;;  %s756_s11 = sphi %s799_s11, %s980_s11   ;;  %s752_s10 = sphi %s797_s10, %s979_s10   ;;  %s748_s9 = sphi %s795_s9, %s978_s9  }
   0xb   : > { %s40_s17 = sadd.s32 1, %s764_s13  ;;  %s51_s18 = sadd.s32 1, %s756_s11 }
   0xc   : > { %p42_p0 = scmp.ge.s32.totalorder %s40_s17, 6  ;;  %p58_p1 = scmp.ne.s32.totalorder %s756_s11, %s752_s10 }
   0xd   : > { %p59_p2 = scmp.eq.s32.totalorder %s768_s14, 0  ;;  %p64_p3 = scmp.ne.s32.totalorder %s752_s10, %s748_s9 }
   0xe   : > { %s984_s17 = smov (%p42_p0, %s40_s17), 0  ;;  %p65_p5 = scmp.eq.s32.totalorder %s528_s15, 0 }
   0xf   : > { %p836_p4 = por %p59_p2, %p58_p1  ;;  %s45_s20 = ssub.s32 %s764_s13, %s984_s17 }
  0x10   : > { %p118_p6 = scmp.eq.s32.totalorder %s528_s15, 5  ;;  %p49_p7 = scmp.eq.s32.totalorder %s45_s20, 0 }
  0x11   : > { %p842_p8 = por %p65_p5, %p64_p3  ;;  %p124_p10 = scmp.eq.s32.totalorder %s529_s16, 5 }
  0x12   : > { %p846_p9 = por %p118_p6, %p58_p1  ;;  %p571_p12 = scmp.lt.s32.totalorder %s768_s14, 6 }
  0x13   : > { %s851_s23 = scalar_select %p49_p7, %s756_s11, %s51_s18  }
  0x14   : > { %p853_p11 = por %p124_p10, %p64_p3  ;;  %s859_s25 = sand.u32 1, %s756_s11  }
  0x15   : > { %s532_s26 = sshll.u32 %s859_s25, 5  ;;  %s552_s27 = sshll.u32 %s764_s13, 8 }
  0x16   : > { %s975_s0 = sld [smem:[#allocation11_spill]]  ;;  %s148_s3 = scalar_lea.vmem [#allocation2], %s532_s26 }
  0x17   : > { %s160_s4 = sshll.u32 %s148_s3, 4  ;;  %p868_p13 = pnand %p571_p12, %p836_p4  ;;  %s161_s4 = int_to_ptr.vmem [resolvable:$true] %s160_s4 }
  0x18   : > { %s145_s6 = scalar_lea.sflag [#allocation3], %s859_s25  ;;  %s641_s7 = scalar_lea.vmem %s161_s4, 512 }
  0x19   : > { %p630_p0 = pneg %p868_p13  ;;  %p642_p1 = scmp.ne.s32.totalorder %s161_s4, %s641_s7 }
  0x1a   : > { %s770_s8 = smov [#allocation2]  }
  0x1b   : > { %p644_p2 = pnand %p642_p1, %p630_p0  ;;  %s646_s15 = sshll.u32 %s770_s8, 4  ;;  %s647_s15 = int_to_ptr.vmem [resolvable:$false] %s646_s15 }
  0x1c   : > { %s159_s30 = scalar_lea.hbm %s975_s0, %s552_s27  ;;  %s648_s16 = scalar_lea.vmem %s647_s15, 1024 }
  0x1d   : > { %p645_p3 = pneg %p644_p2  ;;  %p649_p5 = scmp.lt.s32.totalorder %s161_s4, %s647_s15 }
  0x1e   : > { %p650_p4 = scmp.lt.s32.totalorder %s648_s16, %s641_s7 }
  0x20   : > { %p651_p6 = por %p650_p4, %p649_p5 }
  0x22   : > { %p652_p7 = pnand %p651_p6, %p645_p3 }
  0x24   : > { %655 = shalt.err (!%p652_p7)
}
  0x25   : > { %s771_s18 = smov 1536   ;;  %s772_s19 = smov 256  }
  0x26   : > { %s773_s20 = smov 16   ;;  %p537_p10 = scmp.ge.s32.totalorder %s768_s14, 1 }
  0x27   : > { %563 = dma.hbm_to_vmem [thread:$0]  (!%p868_p13), %s159_s30, 512, %s161_s4, %s145_s6, %s771_s18, %s772_s19, %s773_s20  }
  0x28   : > { %p186_p12 = scmp.lt.s32.totalorder %s768_s14, 7  ;;  %s535_s26 = sshll.u32 %s859_s25, 3 }
  0x29   : > { %s536_s28 = sshll.u32 %s764_s13, 7  ;;  %s174_s29 = scalar_lea.vmem [#allocation5], %s535_s26 }
  0x2a   : > { %p883_p1 = pnand %p537_p10, %p186_p12  ;;  %s181_s3 = sshll.u32 %s174_s29, 4  ;;  %s182_s3 = int_to_ptr.vmem [resolvable:$true] %s181_s3 }
  0x2b   : > { %s179_s15 = scalar_lea.hbm %s968_s1, %s536_s28  ;;  %s171_s16 = scalar_lea.sflag [#allocation6], %s859_s25 }
  0x2c   : > { %s669_s0 = scalar_lea.vmem %s182_s3, 128  ;;  %s774_s30 = smov [#allocation5]  }
  0x2d   : > { %p670_p2 = scmp.ne.s32.totalorder %s182_s3, %s669_s0  ;;  %s674_s4 = sshll.u32 %s774_s30, 4  ;;  %s675_s4 = int_to_ptr.vmem [resolvable:$false] %s674_s4 }
  0x2e   : > { %s676_s6 = scalar_lea.vmem %s675_s4, 256  ;;  %p677_p4 = scmp.lt.s32.totalorder %s182_s3, %s675_s4 }
  0x2f   : > { %p672_p3 = pnand %p670_p2, %p630_p0  ;;  %p678_p6 = scmp.lt.s32.totalorder %s676_s6, %s669_s0 }
  0x31   : > { %p673_p5 = pneg %p672_p3  ;;  %p679_p7 = por %p678_p6, %p677_p4 }
  0x33   : > { %p680_p10 = pnand %p679_p7, %p673_p5 }
  0x35   : > { %683 = shalt.err (!%p680_p10)
}
  0x36   : > { %566 = dma.hbm_to_vmem [thread:$0]  (!%p868_p13), %s179_s15, 128, %s182_s3, %s171_s16  }
  0x37   : > { %190 = sbr.rel (%p883_p1) target bundleno = 278 (0x116), region = 28  ;;  %s900_s25 = sand.u32 (!%p883_p1), 1, %s752_s10  }
  0x38   : > { %s538_s18 = sshll.u32 (!%p883_p1), %s900_s25, 5  ;;  %s193_s19 = scalar_lea.sflag (!%p883_p1), [#allocation3], %s900_s25 }
  0x39   : > { %s196_s20 = scalar_lea.vmem (!%p883_p1), [#allocation2], %s538_s18 }
  0x3c   : > { %735 = dma.done.wait (%p842_p8), %s193_s19, 512  }
  0x3d   : > { %737 = vsyncadd (%p842_p8), %s193_s19, 4294966784  ;;  %s539_s0 = sshll.u32 %s900_s25, 3  ;;  %s202_s5 = scalar_lea.sflag [#allocation6], %s900_s25 }
  0x3e   : > { %s205_s26 = scalar_lea.vmem [#allocation5], %s539_s0 }
  0x3f   : > { %739 = dma.done.wait (%p842_p8), %s202_s5, 128  }
  0x40   : > { %741 = vsyncadd (%p842_p8), %s202_s5, 4294967168  ;;  %v775_v0 = vmov 0.0   ;;  %v237_v1 = vld [vmem:[%s196_s20 + $0x8] sm:$0xff]  ;;  %v543_v2 = vld [vmem:[%s196_s20 + $0x18] sm:$0xff]  ;;  %vm238_vm0 = vcmask 64512   ;;  %s230_s27 = scalar_lea.vmem [#allocation7], %s538_s18 }
  0x41   : > { %306 = vmatprep.mubr.f32.mxu0 %v775_v0  ;;  %382 = vmatprep.mubr.f32.mxu1 %v775_v0  ;;  %v236_v3 = vld [vmem:[%s196_s20] sm:$0xff]  ;;  %v542_v4 = vld [vmem:[%s196_s20 + $0x10] sm:$0xff]  ;;  %s411_s21 = sshll.u32 %s230_s27, 4  ;;  %s553_s28 = sshll.u32 %s760_s12, 8  ;;  %s915_s21 = int_to_ptr.vmem [resolvable:$true] %s411_s21 }
  0x42   : > { %272 = vmatprep.subr.mxu0 %v237_v1  ;;  %348 = vmatprep.subr.mxu1 %v543_v2  ;;  %v235_v5 = vld [vmem:[%s205_s26] sm:$0xff]  ;;  %s920_s7 = scalar_lea.hbm %s969_s2, %s553_s28  ;;  %s393_s8 = scalar_lea.sflag [#allocation4], %s900_s25 }
  0x43   : > { %273 = vmatpush1.msra.mxu0 %v236_v3  ;;  %349 = vmatpush1.msra.mxu1 %v542_v4  ;;  %s684_s12 = scalar_lea.vmem %s915_s21, 512  ;;  %s776_s15 = smov [#allocation7]  }
  0x44   : > { %541 = vmatmul.mubr.msk.f32.vlgmr.msra.gmra.mxu0 %vm238_vm0, %v235_v5  ;;  %544 = vmatmul.mubr.msk.f32.vlgmr.msra.gmra.mxu1 %vm238_vm0, %v235_v5  ;;  %p685_p8 = scmp.ne.s32.totalorder %s915_s21, %s684_s12  ;;  %s688_s16 = sshll.u32 %s776_s15, 4  ;;  %s689_s16 = int_to_ptr.vmem [resolvable:$false] %s688_s16 }
  0x45   : > { %s690_s30 = scalar_lea.vmem %s689_s16, 1024  ;;  %p691_p12 = scmp.lt.s32.totalorder %s915_s21, %s689_s16 }
  0x46   : > { %p686_p13 = pnand %p685_p8, %p846_p9  ;;  %p692_p1 = scmp.lt.s32.totalorder %s690_s30, %s684_s12 }
  0x48   : > { %p687_p0 = pneg %p686_p13  ;;  %p693_p2 = por %p692_p1, %p691_p12 }
  0x4a   : > { %p694_p3 = pnand %p693_p2, %p687_p0 }
 0x104   : > { %v308_v6 = vpop.f32.mrf.mxu0  ;;  %v384_v7 = vpop.f32.mrf.mxu1 }
 0x105   : > { %313 = vst [vmem:[%s230_s27] sm:$0xff] %v308_v6  ;;  %545 = vst [vmem:[%s230_s27 + $0x10] sm:$0xff] %v384_v7 }
 0x106   : > { %v310_v8 = vpop.f32.mrf.mxu0  ;;  %v386_v9 = vpop.f32.mrf.mxu1 }
 0x107   : > { %314 = vst [vmem:[%s230_s27 + $0x8] sm:$0xff] %v310_v8  ;;  %546 = vst [vmem:[%s230_s27 + $0x18] sm:$0xff] %v386_v9 }
 0x108   : > { %697 = shalt.err (!%p694_p3)
}
 0x109   : > { %s698_s4 = scalar_lea.hbm %s920_s7, 512  ;;  %s702_s19 = scalar_lea.hbm %s969_s2, 3072 }
 0x10a   : > { %p699_p5 = scmp.ne.s32.totalorder %s920_s7, %s698_s4  ;;  %p703_p7 = scmp.lt.s32.totalorder %s920_s7, %s969_s2 }
 0x10b   : > { %p704_p10 = scmp.lt.s32.totalorder %s702_s19, %s698_s4 }
 0x10c   : > { %p700_p4 = pnand %p699_p5, %p846_p9 }
 0x10d   : > { %p705_p8 = por %p704_p10, %p703_p7 }
 0x10e   : > { %p701_p6 = pneg %p700_p4 }
 0x110   : > { %p706_p13 = pnand %p705_p8, %p701_p6 }
 0x112   : > { %709 = shalt.err (!%p706_p13)
}
 0x113   : > { %s777_s5 = smov 256   ;;  %s778_s26 = smov 1536  }
 0x114   : > { %s779_s27 = smov 16  }
 0x115   : > { %558 = dma.vmem_to_hbm [thread:$0]  (%p846_p9), %s915_s21, 512, %s920_s7, %s393_s8, %s777_s5, %s778_s26, %s779_s27  }
 0x116 PF: > { %p572_p0 = scmp.ge.s32.totalorder %s768_s14, 2  ;;  %s426_s28 = sand.u32 1, %s748_s9  }
 0x117   : > { %s427_s29 = scalar_lea.sflag [#allocation4], %s426_s28 }
 0x118   : > { %p568_p12 = pnand %p572_p0, %p853_p11 }
 0x11a   : > { %p569_p1 = pneg %p568_p12 }
 0x11c   : > { %743 = dma.done.wait (%p569_p1), %s427_s29, 512  }
 0x11d   : > { %745 = vsyncadd (%p569_p1), %s427_s29, 4294966784  ;;  %s21_s14 = sadd.s32 1, %s768_s14   ;;  %s978_s9 = smov %s752_s10 }
 0x11e   : > { %p18_p2 = scmp.ge.s32.totalorder %s21_s14, 8   ;;  %s979_s10 = smov %s756_s11 }
 0x11f   : > { %s980_s11 = smov %s851_s23  ;;  %s981_s12 = smov %s764_s13 }
 0x120   : > { %s982_s13 = smov %s984_s17  ;;  %20 = sbr.rel (!%p18_p2) target bundleno = 10 (0xa), region = 88 }
 0x125   :  { %432 = vsyncpa [#allocation3], 1 }
 0x126   :  { %434 = vsyncpa [#allocation3 + $0x1], 1 }
 0x127   :  { %435 = vsyncpa [#allocation6], 1 }
 0x128   :  { %437 = vsyncpa [#allocation6 + $0x1], 1 }
 0x129   :  { %438 = vsyncpa [#allocation4], 1 }
 0x12a   :  { %440 = vsyncpa [#allocation4 + $0x1], 1 }

</bundles_post_ra>
